<compile_context>
chip_gen: v6e
topology: v6e:2x2x1
jax: 0.10.0
libtpu: 0.0.40
codegen_flags: <defaults>
</compile_context>

<pallas_src>
import functools

import jax
import jax.numpy as jnp
from jax import lax
from jax.experimental import pallas as pl
from jax.experimental.pallas import tpu as pltpu


def _ce_kernel(w_ref, x_ref, t_ref, loss_ref, wsum_ref, *,
               ignore_label, hw, tile_pixels, tiles_per_split):
    s = pl.program_id(1)                 # pixel-half index (parallel)
    j = pl.program_id(2)                 # pixel-tile index (reduction axis)

    # Zero this (batch, half) accumulator row on its first pixel tile.
    @pl.when(j == 0)
    def _():
        loss_ref[...] = jnp.zeros_like(loss_ref)
        wsum_ref[...] = jnp.zeros_like(wsum_ref)

    x_nat = x_ref[0]                          # (C, TP) native dtype (bf16 stays bf16)
    x = x_nat.astype(jnp.float32)             # f32 copy only for the log-sum-exp
    t = t_ref[0]                              # (1, TP) int32 targets
    w = w_ref[...].astype(jnp.float32)        # (C, 1)  class weights (f32)

    c = x.shape[0]

    # Lane validity: mask the ragged last tile (logits are NOT padded in HBM)
    # and the ignore label.  All uses go through jnp.where, so garbage in the
    # out-of-bounds lanes of the last tile can never leak into the result.
    lane = lax.broadcasted_iota(jnp.int32, t.shape, 1)                 # (1, TP)
    pix = (s * tiles_per_split + j) * tile_pixels + lane
    valid = (pix < hw) & (t >= 0) & (t != ignore_label)                # (1, TP)

    # Numerically stable log-sum-exp over the class (sublane) axis, per lane.
    m = jnp.max(x, axis=0, keepdims=True)                              # (1, TP)
    lse = m + jnp.log(jnp.sum(jnp.exp(x - m), axis=0, keepdims=True))  # (1, TP)

    # One-hot against a tiny (C,1) iota; the (C,TP) broadcast happens inside
    # the compare (no materialized full-size int32 iota per grid step).
    onehot = lax.broadcasted_iota(jnp.int32, (c, 1), 0) == t           # (C, TP) bool

    # Gather logit / class weight at the target index via one-hot select
    # (C is small; avoids a data-dependent gather on TPU).  logit_t is exact
    # in the native dtype (single nonzero per lane), upcast after the reduce.
    # NOTE: a "valid" target >= C contributes nothing (logit_t = w_t = 0),
    # which only differs from PyTorch for malformed inputs.
    logit_t = jnp.sum(jnp.where(onehot, x_nat, jnp.zeros((), x_nat.dtype)),
                      axis=0, keepdims=True).astype(jnp.float32)       # (1, TP)
    w_t = jnp.sum(jnp.where(onehot, w, 0.0), axis=0, keepdims=True)    # (1, TP)

    nll = lse - logit_t                                                # (1, TP)

    # Lane-wide accumulation (pure VPU adds); the single cross-lane reduction
    # happens once in the wrapper, not every grid step.
    loss_ref[0] = loss_ref[0] + jnp.where(valid, w_t * nll, 0.0)
    wsum_ref[0] = wsum_ref[0] + jnp.where(valid, w_t, 0.0)


def cross_entropy_2d(predict, target, weight=None, *, size_average=True,
                     ignore_label=255, tile_pixels=None):
    """predict: (n, c, h, w) float; target: (n, h, w) int; weight: (c,) or None."""
    n, c, h, w = predict.shape
    assert target.shape == (n, h, w)
    hw = h * w

    # Free reshapes only -- native NCHW layout, native dtype (cast happens
    # inside the kernel, so bf16 inputs are read from HBM as bf16).
    logits = predict.reshape(n, c, hw)
    tgt = target.reshape(n, 1, hw).astype(jnp.int32)

    if weight is None:
        wvec = jnp.ones((c, 1), jnp.float32)
    else:
        wvec = jnp.asarray(weight, jnp.float32).reshape(c, 1)

    itemsize = jnp.dtype(predict.dtype).itemsize

    # ---- Tile sizing (perf feedback): scale with C and dtype so each logits
    # DMA block is ~1 MiB, bounded by an explicit VMEM working-set budget.
    # Working-set model per pixel: double-buffered logits (2*c*itemsize) +
    # ~6 materialized (C,·) f32 temporaries in the body + targets/accumulators.
    target_block_bytes = 1 << 20                      # ~1 MiB logits block
    vmem_budget = 24 << 20                            # conservative on v5e/v6e/v7x
    per_pixel_bytes = 2 * c * itemsize + 6 * c * 4 + 48
    tp_target = (target_block_bytes // (c * itemsize)) // 128 * 128
    if tile_pixels is not None:                       # explicit override (tests/tuning)
        tp_target = min(tp_target, (int(tile_pixels) // 128) * 128)
    tp_vmem = (vmem_budget // per_pixel_bytes) // 128 * 128
    tp = max(128, min(tp_target, tp_vmem))
    tp = min(tp, pl.cdiv(hw, 128) * 128)              # never bigger than one row
    tp = max(128, tp)

    num_tiles = pl.cdiv(hw, tp)
    # v7x has 2 TensorCores: split the pixel range in two parallel halves so
    # both cores get work even when n is small.  Only done when the tile count
    # splits evenly (keeps every block index in range); no effect on v5e/v6e.
    if num_tiles >= 2 and num_tiles % 2 == 0:
        n_splits = 2
        tiles_per_split = num_tiles // 2
    else:
        n_splits = 1
        tiles_per_split = num_tiles

    # Explicit scoped-VMEM budget (raises v5e's 16 MiB default; stays well
    # below v7x's 64 MiB physical VMEM).
    vmem_limit = int(min(56 << 20,
                         max(32 << 20, per_pixel_bytes * tp + (4 << 20))))

    kernel = functools.partial(_ce_kernel, ignore_label=ignore_label, hw=hw,
                               tile_pixels=tp, tiles_per_split=tiles_per_split)

    loss_parts, wsum_parts = pl.pallas_call(
        kernel,
        out_shape=(jax.ShapeDtypeStruct((n * n_splits, 1, tp), jnp.float32),
                   jax.ShapeDtypeStruct((n * n_splits, 1, tp), jnp.float32)),
        grid_spec=pltpu.PrefetchScalarGridSpec(
            num_scalar_prefetch=0,
            grid=(n, n_splits, tiles_per_split),       # (batch, pixel-half, pixel-tile)
            in_specs=[
                pl.BlockSpec((c, 1), lambda b, s, j: (0, 0)),          # class weights
                pl.BlockSpec((1, c, tp),                               # logits tile
                             lambda b, s, j, tps=tiles_per_split: (b, 0, s * tps + j)),
                pl.BlockSpec((1, 1, tp),                               # target tile
                             lambda b, s, j, tps=tiles_per_split: (b, 0, s * tps + j)),
            ],
            out_specs=[
                pl.BlockSpec((1, 1, tp),                               # loss accumulator
                             lambda b, s, j, ns=n_splits: (b * ns + s, 0, 0)),
                pl.BlockSpec((1, 1, tp),                               # wsum accumulator
                             lambda b, s, j, ns=n_splits: (b * ns + s, 0, 0)),
            ],
        ),
        compiler_params=pltpu.CompilerParams(
            dimension_semantics=("parallel", "parallel", "arbitrary"),
            vmem_limit_bytes=vmem_limit),
    )(wvec, logits, tgt)

    loss_sum = jnp.sum(loss_parts)
    wsum = jnp.sum(wsum_parts)
    if size_average:
        # NOTE: an all-ignored input gives wsum == 0 -> NaN, same as PyTorch.
        return loss_sum / wsum
    return loss_sum


def _reference(predict, target, weight=None, size_average=True, ignore_label=255):
    n, c, h, w = predict.shape
    logits = jnp.transpose(predict, (0, 2, 3, 1)).reshape(-1, c).astype(jnp.float32)
    tgt = target.reshape(-1).astype(jnp.int32)
    mask = jnp.logical_and(tgt >= 0, tgt != ignore_label)
    safe_t = jnp.where(mask, tgt, 0)
    lse = jax.scipy.special.logsumexp(logits, axis=-1)
    logit_t = jnp.take_along_axis(logits, safe_t[:, None], axis=-1)[:, 0]
    nll = lse - logit_t
    wvec = jnp.ones((c,), jnp.float32) if weight is None else jnp.asarray(weight, jnp.float32)
    w_t = wvec[safe_t]
    mf = mask.astype(jnp.float32)
    num = jnp.sum(mf * w_t * nll)
    den = jnp.sum(mf * w_t)
    return num / den if size_average else num


if __name__ == "__main__":
    key = jax.random.PRNGKey(0)
    k1, k2, k3, k4, k5, k6, k7 = jax.random.split(key, 7)

    # --- Test 1: small NCHW, unweighted + ignored pixels, size_average=True.
    n, c, h, w = 2, 4, 16, 16
    predict = jax.random.normal(k1, (n, c, h, w), dtype=jnp.float32)
    target = jax.random.randint(k2, (n, h, w), 0, c, dtype=jnp.int32)
    ignore_mask = jax.random.bernoulli(k3, 0.2, (n, h, w))
    target = jnp.where(ignore_mask, jnp.int32(255), target)

    loss = cross_entropy_2d(predict, target, weight=None,
                            size_average=True, ignore_label=255)
    loss = jax.block_until_ready(loss)
    ref = _reference(predict, target)
    assert jnp.allclose(loss, ref, atol=1e-5, rtol=1e-5), (loss, ref)

    # --- Test 2: weighted path, size_average=True and False.
    wt = jax.random.uniform(k4, (c,), jnp.float32, 0.5, 2.0)
    loss_w = cross_entropy_2d(predict, target, weight=wt,
                              size_average=True, ignore_label=255)
    loss_w = jax.block_until_ready(loss_w)
    ref_w = _reference(predict, target, weight=wt)
    assert jnp.allclose(loss_w, ref_w, atol=1e-5, rtol=1e-5), (loss_w, ref_w)

    loss_s = jax.block_until_ready(
        cross_entropy_2d(predict, target, weight=wt,
                         size_average=False, ignore_label=255))
    ref_s = _reference(predict, target, weight=wt, size_average=False)
    assert jnp.allclose(loss_s, ref_s, atol=1e-4, rtol=1e-5), (loss_s, ref_s)

    # --- Test 3: exercise the parallel pixel-half split + ragged last tile
    # (n=1, odd C, hw not a multiple of the tile).
    n2, c2, h2, w2 = 1, 5, 45, 45
    predict2 = jax.random.normal(k5, (n2, c2, h2, w2), dtype=jnp.float32)
    target2 = jax.random.randint(k6, (n2, h2, w2), 0, c2, dtype=jnp.int32)
    ignore_mask2 = jax.random.bernoulli(k7, 0.15, (n2, h2, w2))
    target2 = jnp.where(ignore_mask2, jnp.int32(255), target2)
    wt2 = jnp.linspace(0.5, 1.5, c2, dtype=jnp.float32)

    loss2 = cross_entropy_2d(predict2, target2, weight=wt2,
                             size_average=True, ignore_label=255,
                             tile_pixels=128)   # force multi-tile / split path
    loss2 = jax.block_until_ready(loss2)
    ref2 = _reference(predict2, target2, weight=wt2)
    assert jnp.allclose(loss2, ref2, atol=1e-5, rtol=1e-5), (loss2, ref2)

    print("KERNEL_OK")
</pallas_src>

<mosaic_0001>
module attributes {stable_mosaic.version = 11 : i64} {
  func.func @_ce_kernel(%arg0: i32, %arg1: i32, %arg2: i32, %arg3: memref<4x1xf32, #tpu.memory_space<vmem>>, %arg4: memref<1x4x256xf32, #tpu.memory_space<vmem>>, %arg5: memref<1x1x256xi32, #tpu.memory_space<vmem>>, %arg6: memref<1x1x256xf32, #tpu.memory_space<vmem>>, %arg7: memref<1x1x256xf32, #tpu.memory_space<vmem>>) attributes {dimension_semantics = [#tpu.dimension_semantics<parallel>, #tpu.dimension_semantics<parallel>, #tpu.dimension_semantics<arbitrary>], iteration_bounds = array<i64: 2, 1, 1>, scalar_prefetch = 0 : i64, scratch_operands = 0 : i64, tpu.core_type = #tpu.core_type<tc>, window_params = [{pipeline_mode = #tpu.pipeline_mode<synchronous>, transform_indices = @transform_0, window_bounds = array<i64: 4, 1>}, {transform_indices = @transform_1, window_bounds = array<i64: 1, 4, 256>}, {transform_indices = @transform_2, window_bounds = array<i64: 1, 1, 256>}, {transform_indices = @transform_3, window_bounds = array<i64: 1, 1, 256>}, {transform_indices = @transform_4, window_bounds = array<i64: 1, 1, 256>}]} {
    %c0_i32 = arith.constant 0 : i32
    %0 = arith.cmpi eq, %arg2, %c0_i32 : i32
    %1 = arith.extui %0 : i1 to i32
    %c0_i32_0 = arith.constant 0 : i32
    %2 = arith.cmpi ne, %1, %c0_i32_0 : i32
    scf.if %2 {
      %cst_29 = arith.constant 0.000000e+00 : f32
      %63 = vector.broadcast %cst_29 : f32 to vector<1x1x256xf32>
      %c0_30 = arith.constant 0 : index
      %c0_31 = arith.constant 0 : index
      %c0_32 = arith.constant 0 : index
      %64 = vector.load %arg6[%c0_30, %c0_31, %c0_32] : memref<1x1x256xf32, #tpu.memory_space<vmem>>, vector<1x1x256xf32>
      tpu.vector_store %arg6[%c0_30, %c0_31, %c0_32], %63 {strides = array<i32>} : memref<1x1x256xf32, #tpu.memory_space<vmem>>, vector<1x1x256xf32>,
      %cst_33 = arith.constant 0.000000e+00 : f32
      %65 = vector.broadcast %cst_33 : f32 to vector<1x1x256xf32>
      %c0_34 = arith.constant 0 : index
      %c0_35 = arith.constant 0 : index
      %c0_36 = arith.constant 0 : index
      %66 = vector.load %arg7[%c0_34, %c0_35, %c0_36] : memref<1x1x256xf32, #tpu.memory_space<vmem>>, vector<1x1x256xf32>
      tpu.vector_store %arg7[%c0_34, %c0_35, %c0_36], %65 {strides = array<i32>} : memref<1x1x256xf32, #tpu.memory_space<vmem>>, vector<1x1x256xf32>,
    } else {
    }
    %c0 = arith.constant 0 : index
    %c0_1 = arith.constant 0 : index
    %c0_2 = arith.constant 0 : index
    %3 = vector.load %arg4[%c0, %c0_1, %c0_2] : memref<1x4x256xf32, #tpu.memory_space<vmem>>, vector<1x4x256xf32>
    %4 = vector.shape_cast %3 : vector<1x4x256xf32> to vector<4x256xf32>
    %c0_3 = arith.constant 0 : index
    %c0_4 = arith.constant 0 : index
    %c0_5 = arith.constant 0 : index
    %5 = vector.load %arg5[%c0_3, %c0_4, %c0_5] : memref<1x1x256xi32, #tpu.memory_space<vmem>>, vector<1x1x256xi32>
    %6 = vector.shape_cast %5 : vector<1x1x256xi32> to vector<1x256xi32>
    %c0_6 = arith.constant 0 : index
    %c0_7 = arith.constant 0 : index
    %7 = vector.load %arg3[%c0_6, %c0_7] : memref<4x1xf32, #tpu.memory_space<vmem>>, vector<4x1xf32>
    %8 = tpu.iota {dimensions = array<i32: 1>} : vector<1x256xi32>
    %c1_i32 = arith.constant 1 : i32
    %9 = arith.muli %arg1, %c1_i32 : i32
    %10 = arith.addi %9, %arg2 : i32
    %c256_i32 = arith.constant 256 : i32
    %11 = arith.muli %10, %c256_i32 : i32
    %12 = vector.broadcast %11 : i32 to vector<1x256xi32>
    %13 = arith.addi %12, %8 : vector<1x256xi32>
    %c256_i32_8 = arith.constant 256 : i32
    %14 = vector.broadcast %c256_i32_8 : i32 to vector<1x256xi32>
    %15 = arith.cmpi slt, %13, %14 : vector<1x256xi32>
    %c0_i32_9 = arith.constant 0 : i32
    %16 = vector.broadcast %c0_i32_9 : i32 to vector<1x256xi32>
    %17 = arith.cmpi sge, %6, %16 : vector<1x256xi32>
    %18 = arith.andi %15, %17 : vector<1x256xi1>
    %c255_i32 = arith.constant 255 : i32
    %19 = vector.broadcast %c255_i32 : i32 to vector<1x256xi32>
    %20 = arith.cmpi ne, %6, %19 : vector<1x256xi32>
    %21 = arith.andi %18, %20 : vector<1x256xi1>
    %cst = arith.constant dense<0xFF800000> : vector<256xf32>
    %22 = vector.multi_reduction <maximumf>, %4, %cst [0] : vector<4x256xf32> to vector<256xf32>
    %23 = vector.shape_cast %22 : vector<256xf32> to vector<1x256xf32>
    %24 = vector.broadcast %23 : vector<1x256xf32> to vector<4x256xf32>
    %25 = arith.subf %4, %24 : vector<4x256xf32>
    %26 = math.exp %25 : vector<4x256xf32>
    %cst_10 = arith.constant dense<0.000000e+00> : vector<256xf32>
    %27 = vector.multi_reduction <add>, %26, %cst_10 [0] : vector<4x256xf32> to vector<256xf32>
    %28 = vector.shape_cast %27 : vector<256xf32> to vector<1x256xf32>
    %29 = math.log %28 : vector<1x256xf32>
    %30 = arith.addf %23, %29 : vector<1x256xf32>
    %31 = tpu.iota {dimensions = array<i32: 0>} : vector<4x1xi32>
    %32 = vector.broadcast %31 : vector<4x1xi32> to vector<4x256xi32>
    %33 = vector.broadcast %6 : vector<1x256xi32> to vector<4x256xi32>
    %34 = arith.cmpi eq, %32, %33 : vector<4x256xi32>
    %cst_11 = arith.constant 0.000000e+00 : f32
    %35 = vector.broadcast %cst_11 : f32 to vector<4x256xf32>
    %36 = arith.select %34, %4, %35 : vector<4x256xi1>, vector<4x256xf32>
    %cst_12 = arith.constant dense<0.000000e+00> : vector<256xf32>
    %37 = vector.multi_reduction <add>, %36, %cst_12 [0] : vector<4x256xf32> to vector<256xf32>
    %38 = vector.shape_cast %37 : vector<256xf32> to vector<1x256xf32>
    %cst_13 = arith.constant 0.000000e+00 : f32
    %39 = vector.shape_cast %7 : vector<4x1xf32> to vector<4x1xf32>
    %40 = vector.broadcast %39 : vector<4x1xf32> to vector<4x256xf32>
    %41 = vector.broadcast %cst_13 : f32 to vector<4x256xf32>
    %42 = arith.select %34, %40, %41 : vector<4x256xi1>, vector<4x256xf32>
    %cst_14 = arith.constant dense<0.000000e+00> : vector<256xf32>
    %43 = vector.multi_reduction <add>, %42, %cst_14 [0] : vector<4x256xf32> to vector<256xf32>
    %44 = vector.shape_cast %43 : vector<256xf32> to vector<1x256xf32>
    %45 = arith.subf %30, %38 : vector<1x256xf32>
    %c0_15 = arith.constant 0 : index
    %c0_16 = arith.constant 0 : index
    %c0_17 = arith.constant 0 : index
    %46 = vector.load %arg6[%c0_15, %c0_16, %c0_17] : memref<1x1x256xf32, #tpu.memory_space<vmem>>, vector<1x1x256xf32>
    %47 = vector.shape_cast %46 : vector<1x1x256xf32> to vector<1x256xf32>
    %48 = arith.mulf %44, %45 : vector<1x256xf32>
    %cst_18 = arith.constant 0.000000e+00 : f32
    %49 = vector.broadcast %cst_18 : f32 to vector<1x256xf32>
    %50 = arith.select %21, %48, %49 : vector<1x256xi1>, vector<1x256xf32>
    %51 = arith.addf %47, %50 : vector<1x256xf32>
    %c0_19 = arith.constant 0 : index
    %c0_20 = arith.constant 0 : index
    %c0_21 = arith.constant 0 : index
    %52 = vector.load %arg6[%c0_19, %c0_20, %c0_21] : memref<1x1x256xf32, #tpu.memory_space<vmem>>, vector<1x1x256xf32>
    %53 = vector.shape_cast %52 : vector<1x1x256xf32> to vector<1x256xf32>
    %54 = vector.shape_cast %51 : vector<1x256xf32> to vector<1x1x256xf32>
    tpu.vector_store %arg6[%c0_19, %c0_20, %c0_21], %54 {strides = array<i32>} : memref<1x1x256xf32, #tpu.memory_space<vmem>>, vector<1x1x256xf32>,
    %c0_22 = arith.constant 0 : index
    %c0_23 = arith.constant 0 : index
    %c0_24 = arith.constant 0 : index
    %55 = vector.load %arg7[%c0_22, %c0_23, %c0_24] : memref<1x1x256xf32, #tpu.memory_space<vmem>>, vector<1x1x256xf32>
    %56 = vector.shape_cast %55 : vector<1x1x256xf32> to vector<1x256xf32>
    %cst_25 = arith.constant 0.000000e+00 : f32
    %57 = vector.broadcast %cst_25 : f32 to vector<1x256xf32>
    %58 = arith.select %21, %44, %57 : vector<1x256xi1>, vector<1x256xf32>
    %59 = arith.addf %56, %58 : vector<1x256xf32>
    %c0_26 = arith.constant 0 : index
    %c0_27 = arith.constant 0 : index
    %c0_28 = arith.constant 0 : index
    %60 = vector.load %arg7[%c0_26, %c0_27, %c0_28] : memref<1x1x256xf32, #tpu.memory_space<vmem>>, vector<1x1x256xf32>
    %61 = vector.shape_cast %60 : vector<1x1x256xf32> to vector<1x256xf32>
    %62 = vector.shape_cast %59 : vector<1x256xf32> to vector<1x1x256xf32>
    tpu.vector_store %arg7[%c0_26, %c0_27, %c0_28], %62 {strides = array<i32>} : memref<1x1x256xf32, #tpu.memory_space<vmem>>, vector<1x1x256xf32>,
    return
  }
  func.func @transform_0(%arg0: i32, %arg1: i32, %arg2: i32) -> (i32, i32) {
    %c0_i32 = arith.constant 0 : i32
    %c0_i32_0 = arith.constant 0 : i32
    %c0_i32_1 = arith.constant 0 : i32
    return %c0_i32, %c0_i32_0 : i32, i32
  }
  func.func @transform_1(%arg0: i32, %arg1: i32, %arg2: i32) -> (i32, i32, i32) {
    %c1_i32 = arith.constant 1 : i32
    %0 = arith.muli %arg1, %c1_i32 : i32
    %1 = arith.addi %0, %arg2 : i32
    %c0_i32 = arith.constant 0 : i32
    %c0_i32_0 = arith.constant 0 : i32
    return %arg0, %c0_i32, %1 : i32, i32, i32
  }
  func.func @transform_2(%arg0: i32, %arg1: i32, %arg2: i32) -> (i32, i32, i32) {
    %c1_i32 = arith.constant 1 : i32
    %0 = arith.muli %arg1, %c1_i32 : i32
    %1 = arith.addi %0, %arg2 : i32
    %c0_i32 = arith.constant 0 : i32
    %c0_i32_0 = arith.constant 0 : i32
    return %arg0, %c0_i32, %1 : i32, i32, i32
  }
  func.func @transform_3(%arg0: i32, %arg1: i32, %arg2: i32) -> (i32, i32, i32) {
    %c1_i32 = arith.constant 1 : i32
    %0 = arith.muli %arg0, %c1_i32 : i32
    %1 = arith.addi %0, %arg1 : i32
    %c0_i32 = arith.constant 0 : i32
    %c0_i32_0 = arith.constant 0 : i32
    %c0_i32_1 = arith.constant 0 : i32
    return %1, %c0_i32, %c0_i32_0 : i32, i32, i32
  }
  func.func @transform_4(%arg0: i32, %arg1: i32, %arg2: i32) -> (i32, i32, i32) {
    %c1_i32 = arith.constant 1 : i32
    %0 = arith.muli %arg0, %c1_i32 : i32
    %1 = arith.addi %0, %arg1 : i32
    %c0_i32 = arith.constant 0 : i32
    %c0_i32_0 = arith.constant 0 : i32
    %c0_i32_1 = arith.constant 0 : i32
    return %1, %c0_i32, %c0_i32_0 : i32, i32, i32
  }
}

</mosaic_0001>

<bundles_post_ra>
// kernel: tpu_custom_call.1
= control target key start
LH: loop header
LB: loop body
LE: loop exit
PB: predicated region body
PF: predicated region fallthrough
CT: control target
= control target key end

     0   :  { %10 = vsyncpa [#allocation3], 0  ;;  %s1234_s0 = inlined_call_operand.vmem [shape: f32[4,1], index: 0, kind: input, shape index: {}]   ;;  %s1235_s1 = inlined_call_operand.hbm [shape: f32[2,4,256], index: 1, kind: input, shape index: {}]   ;;  %s1236_s2 = inlined_call_operand.vmem [shape: s32[2,1,256], index: 2, kind: input, shape index: {}]   ;;  %s1237_s3 = inlined_call_operand.hbm [shape: f32[2,1,256], index: 3, kind: output, shape index: {0}]   ;;  %s1238_s4 = inlined_call_operand.hbm [shape: f32[2,1,256], index: 4, kind: output, shape index: {1}]  }
   0x1   :  { %12 = vsyncpa [#allocation3 + $0x1], 0 }
   0x2   :  { %13 = vsyncpa [#allocation4], 0 }
   0x3   :  { %15 = vsyncpa [#allocation4 + $0x1], 0 }
   0x4   :  { %16 = vsyncpa [#allocation7], 0 }
   0x5   :  { %18 = vsyncpa [#allocation7 + $0x1], 0  ;;  %s943_s15 = smov 0   ;;  %s945_s16 = smov 0  }
   0x6   :  { %s947_s17 = smov 0   ;;  %s949_s18 = smov 0  }
   0x7   :  { %s951_s19 = smov 0   ;;  %s953_s20 = smov 0  }
   0x8 LB: > { %s671_s21 = sadd.s32 4294967295, %s910_s20   ;;  %s672_s22 = sadd.s32 4294967294, %s910_s20   ;;  %s910_s20 = sphi %s953_s20, %s24_s20   ;;  %s906_s19 = sphi %s951_s19, %s1264_s19   ;;  %s902_s18 = sphi %s949_s18, %s1263_s18   ;;  %s898_s17 = sphi %s947_s17, %s1262_s17   ;;  %s894_s16 = sphi %s945_s16, %s1261_s16   ;;  %s890_s15 = sphi %s943_s15, %s1260_s15  }
   0x9   : > { %s43_s23 = sadd.s32 1, %s906_s19  ;;  %s75_s24 = sadd.s32 1, %s898_s17 }
   0xa   : > { %p45_p0 = scmp.ge.s32.totalorder %s43_s23, 2  ;;  %p82_p1 = scmp.ne.s32.totalorder %s898_s17, %s894_s16 }
   0xb   : > { %p83_p2 = scmp.eq.s32.totalorder %s910_s20, 0  ;;  %p88_p3 = scmp.ne.s32.totalorder %s894_s16, %s890_s15 }
   0xc   : > { %s1266_s23 = smov (%p45_p0, %s43_s23), 0  ;;  %p89_p5 = scmp.eq.s32.totalorder %s671_s21, 0 }
   0xd   : > { %p984_p4 = por %p83_p2, %p82_p1  ;;  %s70_s26 = ssub.s32 %s906_s19, %s1266_s23 }
   0xe   : > { %p144_p6 = scmp.eq.s32.totalorder %s671_s21, 1  ;;  %p73_p7 = scmp.eq.s32.totalorder %s70_s26, 0 }
   0xf   : > { %p990_p8 = por %p89_p5, %p88_p3  ;;  %p150_p10 = scmp.eq.s32.totalorder %s672_s22, 1 }
  0x10   : > { %p994_p9 = por %p144_p6, %p82_p1  ;;  %p711_p13 = scmp.lt.s32.totalorder %s910_s20, 2 }
  0x11   : > { %s999_s29 = scalar_select %p73_p7, %s898_s17, %s75_s24  }
  0x12   : > { %p1001_p11 = por %p150_p10, %p88_p3  ;;  %s201_s5 = sand.u32 1, %s898_s17  }
  0x13   : > { %s675_s6 = sshll.u32 %s201_s5, 3  ;;  %s691_s7 = sshll.u32 %s906_s19, 7 }
  0x14   : > { %s1242_s30 = scalar_select %p1001_p11, 1, 0 }
  0x15   : > { %s214_s10 = scalar_lea.hbm %s1235_s1, %s691_s7  ;;  %s205_s11 = scalar_lea.vmem [#allocation2], %s675_s6 }
  0x16   : > { %s216_s12 = sshll.u32 %s205_s11, 4  ;;  %p1014_p0 = pnand %p711_p13, %p984_p4  ;;  %s217_s12 = int_to_ptr.vmem [resolvable:$true] %s216_s12 }
  0x17   : > { %p678_p1 = scmp.ge.s32.totalorder %s910_s20, 1  ;;  %p235_p2 = scmp.lt.s32.totalorder %s910_s20, 3 }
  0x18   : > { %s202_s14 = scalar_lea.sflag [#allocation3], %s201_s5  ;;  %p774_p3 = pneg %p1014_p0 }
  0x19   : > { %s785_s21 = scalar_lea.vmem %s217_s12, 128  ;;  %s912_s22 = smov [#allocation2]  }
  0x1a   : > { %p786_p5 = scmp.ne.s32.totalorder %s217_s12, %s785_s21  ;;  %s790_s24 = sshll.u32 %s912_s22, 4  ;;  %s791_s24 = int_to_ptr.vmem [resolvable:$false] %s790_s24 }
  0x1b   : > { %s792_s26 = scalar_lea.vmem %s791_s24, 256  ;;  %p793_p10 = scmp.lt.s32.totalorder %s217_s12, %s791_s24 }
  0x1c   : > { %p788_p6 = pnand %p786_p5, %p774_p3  ;;  %p794_p12 = scmp.lt.s32.totalorder %s792_s26, %s785_s21 }
  0x1e   : > { %p789_p7 = pneg %p788_p6  ;;  %p795_p4 = por %p794_p12, %p793_p10 }
  0x20   : > { %p796_p13 = pnand %p795_p4, %p789_p7 }
  0x22   : > { %799 = shalt.err (!%p796_p13)
}
  0x23   : > { %703 = dma.hbm_to_vmem [thread:$0]  (!%p1014_p0), %s214_s10, 128, %s217_s12, %s202_s14  }
  0x24   : > { %p236_p11 = pnand %p678_p1, %p235_p2 }
  0x25   : > { %s1029_s25 = sand.u32 (!%p236_p11), 1, %s894_s16  }
  0x26   : > { %239 = sbr.rel (%p236_p11) target bundleno = 228 (0xe4), region = 32  ;;  %s679_s5 = sshll.u32 (!%p236_p11), %s1029_s25, 3 }
  0x27   : > { %s242_s6 = scalar_lea.sflag (!%p236_p11), [#allocation3], %s1029_s25  ;;  %s1033_s7 = scalar_lea.vmem (!%p236_p11), [#allocation2], %s679_s5 }
  0x2b   : > { %877 = dma.done.wait (%p990_p8), %s242_s6, 128  }
  0x2c   : > { %879 = vsyncadd (%p990_p8), %s242_s6, 4294967168  ;;  %p288_p12 = scmp.lt.s32.totalorder %s902_s18, 1  ;;  %v303_v0 = vlaneseq  ;;  %v913_v1 = vmov 0   ;;  %v311_v4 = vld [vmem:[%s1234_s0] sm:$0xf]  ;;  %s680_s27 = sshll.u32 %s1029_s25, 1 }
  0x2d   : > { %764 = vset.pattern.permute.xlu0 %v913_v1  ;;  %s1084_s21 = scalar_lea.vmem [#allocation6], %s680_s27  ;;  %v914_v18 = vmov 0.0   ;;  %s1089_s22 = scalar_lea.vmem [#allocation5], %s680_s27  ;;  %v309_v19 = vld [vmem:[%s1033_s7] sm:$0xff]  ;;  %vm353_vm9 = vcmask 1043456  }
  0x2e   : > { %s289_s8 = scalar_select %p288_p12, %s902_s18, 1  ;;  %v1041_v2 = vshrl.u32 %v303_v0, 7  ;;  %428 = vperm.xlu0 %764, %v311_v4   ;;  %vm1080_vm8 = vcmp.lt.s32.totalorder %v303_v0, 256  ;;  %v351_v20 = vcombine.high %v309_v19, %v309_v19  ;;  %v354_v21 = vsel %vm353_vm9, %v309_v19, -inf }
  0x2f   : > { %308 = vst.msk [vmem:[%s1084_s21] sm:$0x3] %vm1080_vm8, %v914_v18  ;;  %307 = vst.msk [vmem:[%s1089_s22] sm:$0x3] %vm1080_vm8, %v914_v18  ;;  %v355_v23 = vrot.slane %v354_v21, 4  ;;  %s692_s24 = sshll.u32 %s902_s18, 5 }
  0x30   : > { %s682_s9 = sshll.u32 %s289_s8, 1  ;;  %v326_v5 = vsub.s32 0, %v1041_v2  ;;  %v330_v6 = vsub.s32 1, %v1041_v2  ;;  %v361_v22 = vsel %vm353_vm9, %v351_v20, -inf  ;;  %s537_s26 = sshll.u32 %s1084_s21, 4  ;;  %s1154_s26 = int_to_ptr.vmem [resolvable:$true] %s537_s26 }
  0x31   : > { %s294_s12 = scalar_lea.vmem %s1236_s2, %s682_s9  ;;  %v362_v24 = vrot.slane %v361_v22, 4  ;;  %v356_v25 = vmax.f32 %v354_v21, %v355_v23  ;;  %s522_s5 = sshll.u32 %s1089_s22, 4  ;;  %s1161_s5 = int_to_ptr.vmem [resolvable:$true] %s522_s5 }
  0x32   : > { %v1046_v3 = vld [vmem:[%s294_s12] sm:$0x3]  ;;  %s1152_s8 = scalar_lea.hbm %s1238_s4, %s692_s24  ;;  %s1159_s10 = scalar_lea.hbm %s1237_s3, %s692_s24 }
  0x33   : > { %vm322_vm0 = vcmp.ge.s32.totalorder %v1046_v3, 0  ;;  %vm336_vm1 = vcmp.ne.s32.totalorder %v1046_v3, 255  ;;  %v363_v26 = vmax.f32 %v361_v22, %v362_v24  ;;  %v357_v27 = vrot.slane %v356_v25, 2  ;;  %s507_s11 = scalar_lea.sflag [#allocation7], %s1029_s25  ;;  %s800_s12 = scalar_lea.vmem %s1154_s26, 32 }
  0x34   : > { %v323_v7 = vsel %vm322_vm0, 1, %v913_v1  ;;  %v337_v8 = vsel %vm336_vm1, 1, %v913_v1  ;;  %v403_v48 = vrot.slane %v1046_v3, %v326_v5  ;;  %v407_v49 = vrot.slane %v1046_v3, %v330_v6  ;;  %p801_p8 = scmp.ne.s32.totalorder %s1154_s26, %s800_s12  ;;  %s916_s13 = smov [#allocation6]  }
  0x35   : > { %v327_v9 = vrot.slane %v323_v7, %v326_v5  ;;  %v331_v10 = vrot.slane %v323_v7, %v330_v6  ;;  %v341_v11 = vrot.slane %v337_v8, %v326_v5  ;;  %v345_v12 = vrot.slane %v337_v8, %v330_v6  ;;  %s804_s14 = sshll.u32 %s916_s13, 4  ;;  %s805_s14 = int_to_ptr.vmem [resolvable:$false] %s804_s14 }
  0x36   : > { %v364_v28 = vrot.slane %v363_v26, 2  ;;  %v358_v29 = vmax.f32 %v356_v25, %v357_v27  ;;  %vm1102_vm10 = vcmp.eq.s32.totalorder %v1041_v2, %v403_v48  ;;  %vm1107_vm11 = vcmp.eq.s32.totalorder %v1041_v2, %v407_v49  ;;  %v478_v53 = vld [vmem:[%s1084_s21] sm:$0x3]  ;;  %p802_p11 = pnand %p801_p8, %p994_p9  ;;  %s806_s27 = scalar_lea.vmem %s805_s14, 64 }
  0x37   : > { %vm1055_vm2 = vcmp.ne.s32.totalorder %v327_v9, 0  ;;  %vm1059_vm3 = vcmp.ne.s32.totalorder %v331_v10, 0  ;;  %vm1063_vm4 = vcmp.ne.s32.totalorder %v341_v11, 0  ;;  %vm1067_vm5 = vcmp.ne.s32.totalorder %v345_v12, 0  ;;  %p807_p1 = scmp.lt.s32.totalorder %s1154_s26, %s805_s14  ;;  %p808_p2 = scmp.lt.s32.totalorder %s806_s27, %s800_s12 }
  0x38   : > { %vm348_vm6 = vmand %vm1055_vm2, %vm1063_vm4  ;;  %v365_v30 = vmax.f32 %v363_v26, %v364_v28  ;;  %v359_v31 = vrot.slane %v358_v29, 1  ;;  %v410_v56 = vsel %vm1102_vm10, %v309_v19, 0.0  ;;  %v411_v57 = vsel %vm1107_vm11, %v351_v20, 0.0  ;;  %p803_p0 = pneg %p802_p11 }
  0x39   : > { %vm349_vm7 = vmand %vm1059_vm3, %vm1067_vm5  ;;  %v412_v60 = vsel %vm353_vm9, %v410_v56, 0.0  ;;  %v419_v61 = vsel %vm353_vm9, %v411_v57, 0.0  ;;  %v915_v27 = vmov 1966171168   ;;  %p809_p3 = por %p808_p2, %p807_p1 }
  0x3a   : > { %v366_v32 = vrot.slane %v365_v30, 1  ;;  %v360_v33 = vmax.f32 %v358_v29, %v359_v31  ;;  %v413_v62 = vrot.slane %v412_v60, 4  ;;  %v420_v63 = vrot.slane %v419_v61, 4 }
  0x3b   : > { %v458_v28 = vunpack.c.l.s4 %v915_v27  ;;  %p810_p5 = pnand %p809_p3, %p803_p0 }
  0x3c   : > { %v367_v34 = vmax.f32 %v365_v30, %v366_v32  ;;  %v414_v0 = vadd.f32 %v413_v62, %v412_v60  ;;  %v421_v1 = vadd.f32 %v420_v63, %v419_v61 }
  0x3e   : > { %v370_v35 = vcombine.low %v360_v33, %v367_v34  ;;  %v415_v3 = vrot.slane %v414_v0, 2  ;;  %v422_v4 = vrot.slane %v421_v1, 2 }
  0x40   : > { %v372_v36 = vsub.f32 %v309_v19, %v370_v35  ;;  %v416_v5 = vadd.f32 %v415_v3, %v414_v0  ;;  %v423_v6 = vadd.f32 %v422_v4, %v421_v1 }
  0x42   : > { %v373_v37 = vmul.f32 1.442695, %v372_v36  ;;  %v417_v12 = vrot.slane %v416_v5, 1  ;;  %v424_v18 = vrot.slane %v423_v6, 1 }
  0x44   : > { %766 = vpow2.f32 %v373_v37  ;;  %v418_v29 = vadd.f32 %v417_v12, %v416_v5  ;;  %v425_v30 = vadd.f32 %v424_v18, %v423_v6 }
  0x51   : > { %v767_v38 = vpop.eup %766 }
  0x52   : > { %v376_v39 = vcombine.high %v767_v38, %v767_v38  ;;  %v378_v40 = vsel %vm353_vm9, %v767_v38, 0.0 }
  0x53   : > { %v379_v42 = vrot.slane %v378_v40, 4 }
  0x54   : > { %v385_v41 = vsel %vm353_vm9, %v376_v39, 0.0  ;;  %v459_v39 = vunpack.c.0.s8 %v458_v28 }
  0x55   : > { %v386_v43 = vrot.slane %v385_v41, 4  ;;  %v380_v44 = vadd.f32 %v379_v42, %v378_v40 }
  0x57   : > { %v387_v45 = vadd.f32 %v386_v43, %v385_v41  ;;  %v381_v46 = vrot.slane %v380_v44, 2 }
  0x59   : > { %v388_v47 = vrot.slane %v387_v45, 2  ;;  %v382_v50 = vadd.f32 %v381_v46, %v380_v44  ;;  %v462_v46 = vsub.s32 %v459_v39, %v1041_v2 }
  0x5b   : > { %v389_v51 = vadd.f32 %v388_v47, %v387_v45  ;;  %v383_v54 = vrot.slane %v382_v50, 1 }
  0x5d   : > { %v390_v55 = vrot.slane %v389_v51, 1  ;;  %v384_v58 = vadd.f32 %v383_v54, %v382_v50 }
  0x5f   : > { %v391_v59 = vadd.f32 %v390_v55, %v389_v51  ;;  %768 = vlog2.f32 %v384_v58  ;;  %v449_v55 = vld [vmem:[%s1089_s22] sm:$0x3] }
  0x61   : > { %770 = vlog2.f32 %v391_v59 }
  0x6c   : > { %v769_v7 = vpop.eup %768 }
  0x6d   : > { %v393_v21 = vmul.f32 0.6931472, %v769_v7 }
  0x6e   : > { %v771_v8 = vpop.eup %770 }
  0x6f   : > { %v395_v22 = vmul.f32 0.6931472, %v771_v8  ;;  %v396_v31 = vadd.f32 %v393_v21, %v360_v33 }
  0x71   : > { %v397_v32 = vadd.f32 %v395_v22, %v367_v34  ;;  %v447_v42 = vsub.f32 %v396_v31, %v418_v29 }
  0x73   : > { %v448_v43 = vsub.f32 %v397_v32, %v425_v30 }
  0xa9   : > { %v429_v9 = vpop.permute.xlu0 %428 }
  0xaa   : > { %v431_v10 = vsel %vm1102_vm10, %v429_v9, 0.0  ;;  %v432_v11 = vsel %vm1107_vm11, %v429_v9, 0.0 }
  0xab   : > { %v433_v19 = vsel %vm353_vm9, %v431_v10, 0.0  ;;  %v440_v20 = vsel %vm353_vm9, %v432_v11, 0.0 }
  0xac   : > { %v434_v23 = vrot.slane %v433_v19, 4  ;;  %v441_v24 = vrot.slane %v440_v20, 4 }
  0xae   : > { %v435_v25 = vadd.f32 %v434_v23, %v433_v19  ;;  %v442_v26 = vadd.f32 %v441_v24, %v440_v20 }
  0xb0   : > { %v436_v35 = vrot.slane %v435_v25, 2  ;;  %v443_v36 = vrot.slane %v442_v26, 2 }
  0xb2   : > { %v437_v37 = vadd.f32 %v436_v35, %v435_v25  ;;  %v444_v38 = vadd.f32 %v443_v36, %v442_v26 }
  0xb4   : > { %v438_v40 = vrot.slane %v437_v37, 1  ;;  %v445_v41 = vrot.slane %v444_v38, 1 }
  0xb6   : > { %v439_v44 = vadd.f32 %v438_v40, %v437_v37  ;;  %v446_v45 = vadd.f32 %v445_v41, %v444_v38 }
  0xb8   : > { %v450_v33 = vmul.f32 %v447_v42, %v439_v44  ;;  %v451_v34 = vmul.f32 %v448_v43, %v446_v45  ;;  %v479_v47 = vsel %vm348_vm6, %v439_v44, 0.0  ;;  %v480_v48 = vsel %vm349_vm7, %v446_v45, 0.0 }
  0xb9   : > { %v483_v49 = vcombine.low %v479_v47, %v480_v48 }
  0xba   : > { %v452_v2 = vsel %vm348_vm6, %v450_v33, 0.0  ;;  %v453_v50 = vsel %vm349_vm7, %v451_v34, 0.0 }
  0xbb   : > { %v456_v51 = vcombine.low %v452_v2, %v453_v50  ;;  %v490_v52 = vrot.slane %v483_v49, %v462_v46 }
  0xbd   : > { %v463_v54 = vrot.slane %v456_v51, %v462_v46  ;;  %v497_v13 = vrot.slane %v490_v52, %v462_v46 }
  0xbf   : > { %v470_v15 = vrot.slane %v463_v54, %v462_v46  ;;  %v499_v56 = vadd.f32 %v497_v13, %v478_v53 }
  0xc1   : > { %v472_v14 = vadd.f32 %v470_v15, %v449_v55  ;;  %500 = vst.msk [vmem:[%s1084_s21] sm:$0x3] %vm1080_vm8, %v499_v56 }
  0xc2   : > { %813 = shalt.err (!%p810_p5)
}
  0xc3   : > { %s814_s21 = scalar_lea.hbm %s1152_s8, 32  ;;  %s818_s7 = scalar_lea.hbm %s1238_s4, 64 }
  0xc4   : > { %p815_p6 = scmp.ne.s32.totalorder %s1152_s8, %s814_s21  ;;  %p819_p4 = scmp.lt.s32.totalorder %s1152_s8, %s1238_s4 }
  0xc5   : > { %p820_p13 = scmp.lt.s32.totalorder %s818_s7, %s814_s21 }
  0xc6   : > { %p816_p7 = pnand %p815_p6, %p994_p9 }
  0xc7   : > { %p821_p12 = por %p820_p13, %p819_p4 }
  0xc8   : > { %p817_p10 = pneg %p816_p7 }
  0xca   : > { %p822_p8 = pnand %p821_p12, %p817_p10 }
  0xcc   : > { %825 = shalt.err (!%p822_p8)
}
  0xcd   : > { %697 = dma.vmem_to_hbm [thread:$0]  (%p994_p9), %s1154_s26, 32, %s1152_s8, %s507_s11   ;;  %477 = vst.msk [vmem:[%s1089_s22] sm:$0x3] %vm1080_vm8, %v472_v14 }
  0xce   : > { %s502_s12 = scalar_lea.sflag [#allocation4], %s1029_s25  ;;  %s826_s13 = scalar_lea.vmem %s1161_s5, 32 }
  0xcf   : > { %p827_p11 = scmp.ne.s32.totalorder %s1161_s5, %s826_s13  ;;  %s917_s14 = smov [#allocation5]  }
  0xd0   : > { %s830_s27 = sshll.u32 %s917_s14, 4  ;;  %s831_s27 = int_to_ptr.vmem [resolvable:$false] %s830_s27 }
  0xd1   : > { %p828_p0 = pnand %p827_p11, %p994_p9  ;;  %s832_s21 = scalar_lea.vmem %s831_s27, 64 }
  0xd2   : > { %p833_p2 = scmp.lt.s32.totalorder %s1161_s5, %s831_s27  ;;  %p834_p3 = scmp.lt.s32.totalorder %s832_s21, %s826_s13 }
  0xd3   : > { %p829_p1 = pneg %p828_p0 }
  0xd4   : > { %p835_p5 = por %p834_p3, %p833_p2 }
  0xd6   : > { %p836_p6 = pnand %p835_p5, %p829_p1 }
  0xd8   : > { %839 = shalt.err (!%p836_p6)
}
  0xd9   : > { %s840_s22 = scalar_lea.hbm %s1159_s10, 32  ;;  %s844_s8 = scalar_lea.hbm %s1237_s3, 64 }
  0xda   : > { %p841_p7 = scmp.ne.s32.totalorder %s1159_s10, %s840_s22  ;;  %p845_p13 = scmp.lt.s32.totalorder %s1159_s10, %s1237_s3 }
  0xdb   : > { %p846_p12 = scmp.lt.s32.totalorder %s844_s8, %s840_s22 }
  0xdc   : > { %p842_p10 = pnand %p841_p7, %p994_p9 }
  0xdd   : > { %p847_p8 = por %p846_p12, %p845_p13 }
  0xde   : > { %p843_p4 = pneg %p842_p10 }
  0xe0   : > { %p848_p11 = pnand %p847_p8, %p843_p4 }
  0xe2   : > { %851 = shalt.err (!%p848_p11)
}
  0xe3   : > { %696 = dma.vmem_to_hbm [thread:$0]  (%p994_p9), %s1161_s5, 32, %s1159_s10, %s502_s12  }
  0xe4 PF: > { %s549_s6 = sand.u32 1, %s890_s15   ;;  %p1258_p0 = scmp.ne.s32.totalorder %s1242_s30, 0 }
  0xe5   : > { %p1259_p1 = scmp.ge.s32.totalorder %s910_s20, 2  ;;  %s550_s7 = scalar_lea.sflag [#allocation4], %s549_s6 }
  0xe7   : > { %p705_p2 = pnand %p1259_p1, %p1258_p0 }
  0xe9   : > { %p706_p3 = pneg %p705_p2 }
  0xeb   : > { %881 = dma.done.wait (%p706_p3), %s550_s7, 32  }
  0xec   : > { %883 = vsyncadd (%p706_p3), %s550_s7, 4294967264  ;;  %s559_s18 = scalar_lea.sflag [#allocation7], %s549_s6 }
  0xed   : > { %885 = dma.done.wait (%p706_p3), %s559_s18, 32  }
  0xee   : > { %887 = vsyncadd (%p706_p3), %s559_s18, 4294967264  ;;  %s24_s20 = sadd.s32 1, %s910_s20   ;;  %s1260_s15 = smov %s894_s16 }
  0xef   : > { %p21_p5 = scmp.ge.s32.totalorder %s24_s20, 4   ;;  %s1261_s16 = smov %s898_s17 }
  0xf0   : > { %s1262_s17 = smov %s999_s29  ;;  %s1263_s18 = smov %s906_s19 }
  0xf1   : > { %s1264_s19 = smov %s1266_s23  ;;  %23 = sbr.rel (!%p21_p5) target bundleno = 8 (0x8), region = 101 }
  0xf6   :  { %564 = vsyncpa [#allocation3], 1 }
  0xf7   :  { %566 = vsyncpa [#allocation3 + $0x1], 1 }
  0xf8   :  { %567 = vsyncpa [#allocation4], 1 }
  0xf9   :  { %569 = vsyncpa [#allocation4 + $0x1], 1 }
  0xfa   :  { %570 = vsyncpa [#allocation7], 1 }
  0xfb   :  { %572 = vsyncpa [#allocation7 + $0x1], 1 }

</bundles_post_ra>
